<compile_context>
chip_gen: v7x
topology: tpu7x:2x2x1
jax: 0.10.0
libtpu: 0.0.40
codegen_flags: <defaults>
</compile_context>

<pallas_src>
import jax
import jax.numpy as jnp
from jax.experimental import pallas as pl
from jax.experimental.pallas import tpu as pltpu


# ------------------------------ Pallas kernel -------------------------------

def moe_fused_kernel(x_ref, ge_ref, gate_ref, w1_ref, b1_ref, w2_ref, b2_ref,
                     wo_ref, bo_ref, o_ref):
    """One token tile: top-k-gated SwiGLU over ALL experts via wide matmuls.

    x    : (TN, D)    f32  (cast to bf16 at the dot inputs)
    ge   : (TN, E*H)  f32  top-k gate expanded along the hidden axis
    gate : (TN, E)    f32  top-k gate (for the per-expert output bias)
    w1/w2: (D, E*H)   bf16 concatenated expert up-projections
    b1/b2: (1, E*H)   f32
    wo   : (E*H, D)   bf16 stacked expert down-projections
    bo   : (E, D)     f32
    out  : (TN, D)    f32
    """
    x = x_ref[...].astype(jnp.bfloat16)
    h1 = jnp.dot(x, w1_ref[...], preferred_element_type=jnp.float32) + b1_ref[...]
    h2 = jnp.dot(x, w2_ref[...], preferred_element_type=jnp.float32) + b2_ref[...]
    # SwiGLU in f32 (VPU/EUP). Gate *before* the stacked down-projection:
    # sum_e g_e * (h_e @ Wo_e)  ==  (concat_e g_e * h_e) @ Wo_stacked.
    h = h1 * (h2 * jax.nn.sigmoid(h2))
    hg = h * ge_ref[...]
    y = jnp.dot(hg.astype(jnp.bfloat16), wo_ref[...],
                preferred_element_type=jnp.float32)
    # Gated per-expert output bias: sum_e g_e * bo_e  (tiny f32 dot).
    y = y + jnp.dot(gate_ref[...], bo_ref[...],
                    preferred_element_type=jnp.float32)
    o_ref[...] = y.astype(o_ref.dtype)


# --------------------------------- wrapper ----------------------------------

def sparse_moe_forward(x, params, num_experts=8, top_k=2):
    B, S, D = x.shape
    N = B * S
    E = num_experts
    H = params["W1"].shape[-1]
    EH = E * H
    x_flat = x.reshape(N, D).astype(jnp.float32)

    # --- router: tiny (N,D)x(D,E) matmul + softmax + top-k left to XLA ------
    logits = x_flat @ params["Wr"] + params["br"]
    router_probs = jax.nn.softmax(logits, axis=-1)
    topk_probs, topk_indices = jax.lax.top_k(router_probs, top_k)     # (N,k)
    onehot = jax.nn.one_hot(topk_indices, E, dtype=jnp.float32)       # (N,k,E)
    gate = jnp.sum(onehot * topk_probs[..., None], axis=1)            # (N,E)
    gate_exp = jnp.repeat(gate, H, axis=-1)                           # (N,E*H)

    # --- concatenate expert weights so the kernel runs 3 wide matmuls -------
    w1_all = jnp.transpose(params["W1"], (1, 0, 2)).reshape(D, EH).astype(jnp.bfloat16)
    w2_all = jnp.transpose(params["W2"], (1, 0, 2)).reshape(D, EH).astype(jnp.bfloat16)
    b1_all = params["b1"].reshape(1, EH)
    b2_all = params["b2"].reshape(1, EH)
    wo_all = params["Wo"].reshape(EH, D).astype(jnp.bfloat16)
    bo_all = params["bo"].reshape(E, D)

    # Token tile: multiple of 8 (f32 sublane) and >=2 tiles when possible so
    # the "parallel" axis can shard across both TensorCores on v7x.
    TN = 8 if (N % 8 == 0 and N >= 16) else N
    assert N % TN == 0, "token count must be divisible by the token tile"
    grid = (pl.cdiv(N, TN),)

    out_flat = pl.pallas_call(
        moe_fused_kernel,
        out_shape=jax.ShapeDtypeStruct((N, D), jnp.float32),
        grid=grid,
        in_specs=[
            pl.BlockSpec((TN, D), lambda i: (i, 0)),    # x
            pl.BlockSpec((TN, EH), lambda i: (i, 0)),   # gate expanded (lane-dense)
            pl.BlockSpec((TN, E), lambda i: (i, 0)),    # gate
            pl.BlockSpec((D, EH), lambda i: (0, 0)),    # W1 (constant map -> DMA once)
            pl.BlockSpec((1, EH), lambda i: (0, 0)),    # b1
            pl.BlockSpec((D, EH), lambda i: (0, 0)),    # W2
            pl.BlockSpec((1, EH), lambda i: (0, 0)),    # b2
            pl.BlockSpec((EH, D), lambda i: (0, 0)),    # Wo
            pl.BlockSpec((E, D), lambda i: (0, 0)),     # bo
        ],
        out_specs=pl.BlockSpec((TN, D), lambda i: (i, 0)),
        compiler_params=pltpu.CompilerParams(
            dimension_semantics=("parallel",)),
    )(x_flat, gate_exp, gate, w1_all, b1_all, w2_all, b2_all, wo_all, bo_all)

    # --- load-balancing loss (cheap scalar reductions, plain JAX) -----------
    in_topk = jnp.any(topk_indices[..., None] == jnp.arange(E), axis=1)  # (N,E)
    f_i = jnp.mean(in_topk.astype(jnp.float32), axis=0)                  # (E,)
    P_i = jnp.mean(router_probs, axis=0)                                 # (E,)
    load_balancing_loss = 0.01 * E * jnp.sum(f_i * P_i)

    return out_flat.reshape(B, S, D), load_balancing_loss


# -------------------------- deterministic params ----------------------------

def init_params(key, d_model, d_hidden, num_experts):
    ks = jax.random.split(key, 8)
    s = 0.05
    return {
        "W1": jax.random.normal(ks[0], (num_experts, d_model, d_hidden), jnp.float32) * s,
        "b1": jax.random.normal(ks[1], (num_experts, 1, d_hidden), jnp.float32) * s,
        "W2": jax.random.normal(ks[2], (num_experts, d_model, d_hidden), jnp.float32) * s,
        "b2": jax.random.normal(ks[3], (num_experts, 1, d_hidden), jnp.float32) * s,
        "Wo": jax.random.normal(ks[4], (num_experts, d_hidden, d_model), jnp.float32) * s,
        "bo": jax.random.normal(ks[5], (num_experts, 1, d_model), jnp.float32) * s,
        "Wr": jax.random.normal(ks[6], (d_model, num_experts), jnp.float32) * s,
        "br": jax.random.normal(ks[7], (1, num_experts), jnp.float32) * s,
    }


# --------------------------- pure-JAX reference ------------------------------

def reference_forward(x, p, num_experts, top_k, dot_dtype=jnp.float32):
    """Mirrors the PyTorch module; dot_dtype selects matmul operand precision."""
    B, S, D = x.shape
    xf = x.reshape(-1, D)
    logits = xf @ p["Wr"] + p["br"]
    probs = jax.nn.softmax(logits, axis=-1)
    tp, ti = jax.lax.top_k(probs, top_k)

    def dot(a, b):
        return jnp.dot(a.astype(dot_dtype), b.astype(dot_dtype),
                       preferred_element_type=jnp.float32)

    out = jnp.zeros_like(xf)
    for i in range(top_k):
        idx = ti[:, i]
        y = jnp.zeros_like(xf)
        for eid in range(num_experts):
            h1 = dot(xf, p["W1"][eid]) + p["b1"][eid, 0]
            h2 = dot(xf, p["W2"][eid]) + p["b2"][eid, 0]
            ye = dot(h1 * jax.nn.silu(h2), p["Wo"][eid]) + p["bo"][eid, 0]
            y = jnp.where((idx == eid)[:, None], ye, y)
        out = out + tp[:, i:i + 1] * y
    f_i = jnp.mean(jnp.any(ti[..., None] == jnp.arange(num_experts), axis=1)
                   .astype(jnp.float32), axis=0)
    P_i = probs.mean(0)
    loss = 0.01 * num_experts * jnp.sum(f_i * P_i)
    return out.reshape(B, S, D), loss


# ----------------------------------- main ------------------------------------

if __name__ == "__main__":
    B, S, D_MODEL, D_HIDDEN = 2, 8, 32, 64
    NUM_EXPERTS, TOP_K = 8, 2

    key = jax.random.PRNGKey(0)
    kx, kp = jax.random.split(key)
    x = jax.random.normal(kx, (B, S, D_MODEL), jnp.float32)
    params = init_params(kp, D_MODEL, D_HIDDEN, NUM_EXPERTS)

    fwd = jax.jit(lambda x, p: sparse_moe_forward(x, p, NUM_EXPERTS, TOP_K))
    out, loss = fwd(x, params)
    out = jax.block_until_ready(out)
    loss = jax.block_until_ready(loss)

    # Tight check vs. a reference using the same bf16-operand / f32-accum dots.
    ref_bf16, ref_loss = reference_forward(x, params, NUM_EXPERTS, TOP_K,
                                           dot_dtype=jnp.bfloat16)
    # Sanity check vs. the pure-f32 module semantics.
    ref_f32, _ = reference_forward(x, params, NUM_EXPERTS, TOP_K,
                                   dot_dtype=jnp.float32)

    assert out.shape == (B, S, D_MODEL)
    assert jnp.allclose(out, ref_bf16, atol=1e-3, rtol=1e-3)
    assert jnp.allclose(out, ref_f32, atol=1e-2, rtol=1e-2)
    assert jnp.allclose(loss, ref_loss, atol=1e-5, rtol=1e-5)

    print("KERNEL_OK")
</pallas_src>

<mosaic_0001>
module attributes {stable_mosaic.version = 11 : i64} {
  func.func @moe_fused_kernel(%arg0: i32, %arg1: memref<8x32xf32, #tpu.memory_space<vmem>>, %arg2: memref<8x512xf32, #tpu.memory_space<vmem>>, %arg3: memref<8x8xf32, #tpu.memory_space<vmem>>, %arg4: memref<32x512xbf16, #tpu.memory_space<vmem>>, %arg5: memref<1x512xf32, #tpu.memory_space<vmem>>, %arg6: memref<32x512xbf16, #tpu.memory_space<vmem>>, %arg7: memref<1x512xf32, #tpu.memory_space<vmem>>, %arg8: memref<512x32xbf16, #tpu.memory_space<vmem>>, %arg9: memref<8x32xf32, #tpu.memory_space<vmem>>, %arg10: memref<8x32xf32, #tpu.memory_space<vmem>>) attributes {dimension_semantics = [#tpu.dimension_semantics<parallel>], iteration_bounds = array<i64: 2>, scalar_prefetch = 0 : i64, scratch_operands = 0 : i64, tpu.core_type = #tpu.core_type<tc>, window_params = [{transform_indices = @transform_0, window_bounds = array<i64: 8, 32>}, {transform_indices = @transform_1, window_bounds = array<i64: 8, 512>}, {transform_indices = @transform_2, window_bounds = array<i64: 8, 8>}, {pipeline_mode = #tpu.pipeline_mode<synchronous>, transform_indices = @transform_3, window_bounds = array<i64: 32, 512>}, {pipeline_mode = #tpu.pipeline_mode<synchronous>, transform_indices = @transform_4, window_bounds = array<i64: 1, 512>}, {pipeline_mode = #tpu.pipeline_mode<synchronous>, transform_indices = @transform_5, window_bounds = array<i64: 32, 512>}, {pipeline_mode = #tpu.pipeline_mode<synchronous>, transform_indices = @transform_6, window_bounds = array<i64: 1, 512>}, {pipeline_mode = #tpu.pipeline_mode<synchronous>, transform_indices = @transform_7, window_bounds = array<i64: 512, 32>}, {pipeline_mode = #tpu.pipeline_mode<synchronous>, transform_indices = @transform_8, window_bounds = array<i64: 8, 32>}, {transform_indices = @transform_9, window_bounds = array<i64: 8, 32>}]} {
    %c0 = arith.constant 0 : index
    %c0_0 = arith.constant 0 : index
    %0 = vector.load %arg1[%c0, %c0_0] : memref<8x32xf32, #tpu.memory_space<vmem>>, vector<8x32xf32>
    %1 = arith.truncf %0 : vector<8x32xf32> to vector<8x32xbf16>
    %c0_1 = arith.constant 0 : index
    %c0_2 = arith.constant 0 : index
    %2 = vector.load %arg4[%c0_1, %c0_2] : memref<32x512xbf16, #tpu.memory_space<vmem>>, vector<32x512xbf16>
    %cst = arith.constant dense<0.000000e+00> : vector<8x512xf32>
    %3 = tpu.matmul %1, %2, %cst {dimension_numbers = #tpu.dot_dimension_numbers<[1], [0], [0], [1], [0, 0, 1, 1], [], []>} : vector<8x32xbf16>, vector<32x512xbf16>, vector<8x512xf32> -> vector<8x512xf32>
    %c0_3 = arith.constant 0 : index
    %c0_4 = arith.constant 0 : index
    %4 = vector.load %arg5[%c0_3, %c0_4] : memref<1x512xf32, #tpu.memory_space<vmem>>, vector<1x512xf32>
    %5 = vector.broadcast %4 : vector<1x512xf32> to vector<8x512xf32>
    %6 = arith.addf %3, %5 : vector<8x512xf32>
    %c0_5 = arith.constant 0 : index
    %c0_6 = arith.constant 0 : index
    %7 = vector.load %arg6[%c0_5, %c0_6] : memref<32x512xbf16, #tpu.memory_space<vmem>>, vector<32x512xbf16>
    %cst_7 = arith.constant dense<0.000000e+00> : vector<8x512xf32>
    %8 = tpu.matmul %1, %7, %cst_7 {dimension_numbers = #tpu.dot_dimension_numbers<[1], [0], [0], [1], [0, 0, 1, 1], [], []>} : vector<8x32xbf16>, vector<32x512xbf16>, vector<8x512xf32> -> vector<8x512xf32>
    %c0_8 = arith.constant 0 : index
    %c0_9 = arith.constant 0 : index
    %9 = vector.load %arg7[%c0_8, %c0_9] : memref<1x512xf32, #tpu.memory_space<vmem>>, vector<1x512xf32>
    %10 = vector.broadcast %9 : vector<1x512xf32> to vector<8x512xf32>
    %11 = arith.addf %8, %10 : vector<8x512xf32>
    %12 = arith.negf %11 : vector<8x512xf32>
    %13 = math.exp %12 : vector<8x512xf32>
    %cst_10 = arith.constant 1.000000e+00 : f32
    %14 = vector.broadcast %cst_10 : f32 to vector<8x512xf32>
    %15 = arith.addf %14, %13 : vector<8x512xf32>
    %16 = arith.divf %14, %15 : vector<8x512xf32>
    %17 = arith.mulf %11, %16 : vector<8x512xf32>
    %18 = arith.mulf %6, %17 : vector<8x512xf32>
    %c0_11 = arith.constant 0 : index
    %c0_12 = arith.constant 0 : index
    %19 = vector.load %arg2[%c0_11, %c0_12] : memref<8x512xf32, #tpu.memory_space<vmem>>, vector<8x512xf32>
    %20 = arith.mulf %18, %19 : vector<8x512xf32>
    %21 = arith.truncf %20 : vector<8x512xf32> to vector<8x512xbf16>
    %c0_13 = arith.constant 0 : index
    %c0_14 = arith.constant 0 : index
    %22 = vector.load %arg8[%c0_13, %c0_14] : memref<512x32xbf16, #tpu.memory_space<vmem>>, vector<512x32xbf16>
    %cst_15 = arith.constant dense<0.000000e+00> : vector<8x32xf32>
    %23 = tpu.matmul %21, %22, %cst_15 {dimension_numbers = #tpu.dot_dimension_numbers<[1], [0], [0], [1], [0, 0, 1, 1], [], []>} : vector<8x512xbf16>, vector<512x32xbf16>, vector<8x32xf32> -> vector<8x32xf32>
    %c0_16 = arith.constant 0 : index
    %c0_17 = arith.constant 0 : index
    %24 = vector.load %arg3[%c0_16, %c0_17] : memref<8x8xf32, #tpu.memory_space<vmem>>, vector<8x8xf32>
    %c0_18 = arith.constant 0 : index
    %c0_19 = arith.constant 0 : index
    %25 = vector.load %arg9[%c0_18, %c0_19] : memref<8x32xf32, #tpu.memory_space<vmem>>, vector<8x32xf32>
    %cst_20 = arith.constant dense<0.000000e+00> : vector<8x32xf32>
    %26 = tpu.matmul %24, %25, %cst_20 {dimension_numbers = #tpu.dot_dimension_numbers<[1], [0], [0], [1], [0, 0, 1, 1], [], []>} : vector<8x8xf32>, vector<8x32xf32>, vector<8x32xf32> -> vector<8x32xf32>
    %27 = arith.addf %23, %26 : vector<8x32xf32>
    %c0_21 = arith.constant 0 : index
    %c0_22 = arith.constant 0 : index
    %28 = vector.load %arg10[%c0_21, %c0_22] : memref<8x32xf32, #tpu.memory_space<vmem>>, vector<8x32xf32>
    tpu.vector_store %arg10[%c0_21, %c0_22], %27 {strides = array<i32>} : memref<8x32xf32, #tpu.memory_space<vmem>>, vector<8x32xf32>,
    return
  }
  func.func @transform_0(%arg0: i32) -> (i32, i32) {
    %c0_i32 = arith.constant 0 : i32
    %c0_i32_0 = arith.constant 0 : i32
    return %arg0, %c0_i32 : i32, i32
  }
  func.func @transform_1(%arg0: i32) -> (i32, i32) {
    %c0_i32 = arith.constant 0 : i32
    %c0_i32_0 = arith.constant 0 : i32
    return %arg0, %c0_i32 : i32, i32
  }
  func.func @transform_2(%arg0: i32) -> (i32, i32) {
    %c0_i32 = arith.constant 0 : i32
    %c0_i32_0 = arith.constant 0 : i32
    return %arg0, %c0_i32 : i32, i32
  }
  func.func @transform_3(%arg0: i32) -> (i32, i32) {
    %c0_i32 = arith.constant 0 : i32
    %c0_i32_0 = arith.constant 0 : i32
    %c0_i32_1 = arith.constant 0 : i32
    return %c0_i32, %c0_i32_0 : i32, i32
  }
  func.func @transform_4(%arg0: i32) -> (i32, i32) {
    %c0_i32 = arith.constant 0 : i32
    %c0_i32_0 = arith.constant 0 : i32
    %c0_i32_1 = arith.constant 0 : i32
    return %c0_i32, %c0_i32_0 : i32, i32
  }
  func.func @transform_5(%arg0: i32) -> (i32, i32) {
    %c0_i32 = arith.constant 0 : i32
    %c0_i32_0 = arith.constant 0 : i32
    %c0_i32_1 = arith.constant 0 : i32
    return %c0_i32, %c0_i32_0 : i32, i32
  }
  func.func @transform_6(%arg0: i32) -> (i32, i32) {
    %c0_i32 = arith.constant 0 : i32
    %c0_i32_0 = arith.constant 0 : i32
    %c0_i32_1 = arith.constant 0 : i32
    return %c0_i32, %c0_i32_0 : i32, i32
  }
  func.func @transform_7(%arg0: i32) -> (i32, i32) {
    %c0_i32 = arith.constant 0 : i32
    %c0_i32_0 = arith.constant 0 : i32
    %c0_i32_1 = arith.constant 0 : i32
    return %c0_i32, %c0_i32_0 : i32, i32
  }
  func.func @transform_8(%arg0: i32) -> (i32, i32) {
    %c0_i32 = arith.constant 0 : i32
    %c0_i32_0 = arith.constant 0 : i32
    %c0_i32_1 = arith.constant 0 : i32
    return %c0_i32, %c0_i32_0 : i32, i32
  }
  func.func @transform_9(%arg0: i32) -> (i32, i32) {
    %c0_i32 = arith.constant 0 : i32
    %c0_i32_0 = arith.constant 0 : i32
    return %arg0, %c0_i32 : i32, i32
  }
}

</mosaic_0001>

<bundles_post_ra>
// kernel: _lambda_.1
= control target key start
LH: loop header
LB: loop body
LE: loop exit
PB: predicated region body
PF: predicated region fallthrough
CT: control target
= control target key end

     0   :  { %14 = vsyncpa [#allocation3], 0  ;;  %s1859_s0 = inlined_call_operand.vmem [shape: f32[16,32], index: 0, kind: input, shape index: {}]   ;;  %s1860_s1 = inlined_call_operand.vmem [shape: f32[16,512], index: 1, kind: input, shape index: {}]   ;;  %s1861_s2 = inlined_call_operand.vmem [shape: f32[16,8], index: 2, kind: input, shape index: {}]   ;;  %s1862_s3 = inlined_call_operand.vmem [shape: bf16[32,512], index: 3, kind: input, shape index: {}]   ;;  %s1863_s4 = inlined_call_operand.vmem [shape: f32[1,512], index: 4, kind: input, shape index: {}]   ;;  %s1864_s5 = inlined_call_operand.vmem [shape: bf16[32,512], index: 5, kind: input, shape index: {}]   ;;  %s1865_s6 = inlined_call_operand.vmem [shape: f32[1,512], index: 6, kind: input, shape index: {}]   ;;  %s1866_s7 = inlined_call_operand.vmem [shape: bf16[512,32], index: 7, kind: input, shape index: {}]   ;;  %s1867_s8 = inlined_call_operand.vmem [shape: f32[8,32], index: 8, kind: input, shape index: {}]   ;;  %s1868_s9 = inlined_call_operand.hbm [shape: f32[16,32], index: 9, kind: output, shape index: {}]  }
   0x1   :  { %16 = vsyncpa [#allocation3 + $0x1], 0  ;;  %s1584_s30 = smov 0   ;;  %s1586_s10 = smov 0  }
   0x2   :  { %s1588_s11 = smov 0   ;;  %s1590_s12 = smov 0  }
   0x3 LB: > { %s1605_s13 = sadd.s32 4294967295, %s1528_s12   ;;  %s1230_s14 = sadd.s32 4294967294, %s1528_s12   ;;  %s1528_s12 = sphi %s1590_s12, %s1876_s12   ;;  %s1524_s11 = sphi %s1588_s11, %s1875_s11   ;;  %s1520_s10 = sphi %s1586_s10, %s1874_s10   ;;  %s1516_s30 = sphi %s1584_s30, %s1873_s30  }
   0x4   : > { %s1609_s15 = sadd.s32 1, %s1528_s12   ;;  %s233_s16 = sadd.s32 1, %s1524_s11 }
   0x5   : > { %s230_s17 = ssub.s32 %s1528_s12, %s1609_s15  ;;  %p243_p0 = scmp.ne.s32.totalorder %s1524_s11, %s1520_s10 }
   0x6   : > { %p231_p1 = scmp.eq.s32.totalorder %s230_s17, 0  ;;  %p244_p2 = scmp.eq.s32.totalorder %s1605_s13, 1 }
   0x7   : > { %p249_p3 = scmp.ne.s32.totalorder %s1520_s10, %s1516_s30  ;;  %p250_p4 = scmp.eq.s32.totalorder %s1230_s14, 1 }
   0x8   : > { %s1620_s18 = scalar_select %p231_p1, %s1524_s11, %s233_s16  }
   0x9   : > { %p1622_p5 = por %p244_p2, %p243_p0  ;;  %p1626_p6 = por %p250_p4, %p249_p3 }
   0xa   : > { %1869 = sst [smem:[#allocation5_spill]] %s1620_s18  ;;  %p1233_p7 = scmp.ge.s32.totalorder %s1528_s12, 1 }
   0xb   : > { %p308_p8 = scmp.lt.s32.totalorder %s1528_s12, 3 }
   0xd   : > { %p309_p9 = pnand %p1233_p7, %p308_p8 }
   0xe   : > { %v1394_v0 = vld [vmem:[%s1862_s3 + $0x4] ss:$16 sps:$4 sm:$0xff] (!%p309_p9)   ;;  %p352_p10 = scmp.lt.s32.totalorder (!%p309_p9), %s1605_s13, 1  ;;  %v1396_v1 = vld [vmem:[%s1862_s3 + $0xc] ss:$16 sps:$4 sm:$0xff] (!%p309_p9)   ;;  %v1530_v2 = vmov (!%p309_p9), 0   ;;  %v378_v54 = vlaneseq (!%p309_p9) }
   0xf   : > { %312 = sbr.rel (%p309_p9) target bundleno = 521 (0x209), region = 56  ;;  %474 = vmatprep.mubr.bf16.mxu0 (!%p309_p9), %v1530_v2  ;;  %515 = vmatprep.mubr.bf16.mxu1 (!%p309_p9), %v1530_v2  ;;  %v1398_v3 = vld [vmem:[%s1862_s3] ss:$16 sps:$4 sm:$0xff] (!%p309_p9)   ;;  %v1399_v4 = vld [vmem:[%s1862_s3 + $0x8] ss:$16 sps:$4 sm:$0xff] (!%p309_p9)   ;;  %vm438_vm0 = vcmask (!%p309_p9), 261120  }
  0x10   : > { %442 = vmatprep.subr.bf16.mxu0 (!%p309_p9), %v1394_v0  ;;  %483 = vmatprep.subr.bf16.mxu1 (!%p309_p9), %v1396_v1  ;;  %v1400_v5 = vld [vmem:[%s1862_s3 + $0x24] ss:$16 sps:$4 sm:$0xff] (!%p309_p9)   ;;  %v1402_v6 = vld [vmem:[%s1862_s3 + $0x2c] ss:$16 sps:$4 sm:$0xff] (!%p309_p9)   ;;  %v1404_v7 = vld [vmem:[%s1862_s3 + $0x20] ss:$16 sps:$4 sm:$0xff] (!%p309_p9)  }
  0x11   : > { %443 = vmatpush1.bf16.msra.mxu0 (!%p309_p9), %v1398_v3  ;;  %484 = vmatpush1.bf16.msra.mxu1 (!%p309_p9), %v1399_v4  ;;  %v1405_v8 = vld [vmem:[%s1862_s3 + $0x28] ss:$16 sps:$4 sm:$0xff] (!%p309_p9)   ;;  %v1406_v10 = vld [vmem:[%s1864_s5] ss:$16 sps:$4 sm:$0xff] (!%p309_p9)   ;;  %v1408_v11 = vld [vmem:[%s1864_s5 + $0x4] ss:$16 sps:$4 sm:$0xff] (!%p309_p9)  }
  0x12   : > { %444 = vmatprep.subr.bf16.mxu0 (!%p309_p9), %v1400_v5  ;;  %485 = vmatprep.subr.bf16.mxu1 (!%p309_p9), %v1402_v6  ;;  %v1409_v13 = vld [vmem:[%s1864_s5 + $0x8] ss:$16 sps:$4 sm:$0xff] (!%p309_p9)   ;;  %v1411_v14 = vld [vmem:[%s1864_s5 + $0xc] ss:$16 sps:$4 sm:$0xff] (!%p309_p9)   ;;  %v1414_v15 = vld [vmem:[%s1864_s5 + $0x24] ss:$16 sps:$4 sm:$0xff] (!%p309_p9)  }
  0x13   : > { %v1412_v16 = vld [vmem:[%s1864_s5 + $0x20] ss:$16 sps:$4 sm:$0xff] (!%p309_p9)   ;;  %v1417_v17 = vld [vmem:[%s1864_s5 + $0x2c] ss:$16 sps:$4 sm:$0xff] (!%p309_p9)   ;;  %v1415_v18 = vld [vmem:[%s1864_s5 + $0x28] ss:$16 sps:$4 sm:$0xff] (!%p309_p9)  }
  0x14   : > { %v1531_v19 = vmov (!%p309_p9), 0.0   ;;  %v785_v20 = vld [vmem:[%s1867_s8] sm:$0xff] (!%p309_p9)  ;;  %vm1532_vm1 = vmmov (!%p309_p9), 0   ;;  %vm786_vm2 = vcmask (!%p309_p9), 64512   ;;  %v1422_v26 = vld [vmem:[%s1866_s7 + $0x48] sm:$0xff] (!%p309_p9)   ;;  %v1426_v30 = vld [vmem:[%s1866_s7 + $0x50] sm:$0xff] (!%p309_p9)  }
  0x15   : > { %445 = vmatpush1.bf16.msra.mxu0 (!%p309_p9), %v1404_v7  ;;  %486 = vmatpush1.bf16.msra.mxu1 (!%p309_p9), %v1405_v8  ;;  %v1418_v21 = vld [vmem:[%s1866_s7 + $0x40] sm:$0xff] (!%p309_p9)   ;;  %v1423_v27 = vld [vmem:[%s1866_s7 + $0xc8] sm:$0xff] (!%p309_p9)   ;;  %v1427_v31 = vld [vmem:[%s1866_s7 + $0xd0] sm:$0xff] (!%p309_p9)   ;;  %v379_v55 = vshrl.u32 (!%p309_p9), %v378_v54, 7  ;;  %s1297_s16 = sshll.u32 (!%p309_p9), %s1605_s13, 7 }
  0x16   : > { %s1646_s29 = scalar_select %p352_p10, %s1605_s13, 1  ;;  %594 = vmatprep.subr.bf16.mxu0 %v1408_v11  ;;  %635 = vmatprep.subr.bf16.mxu1 %v1411_v14  ;;  %v1419_v22 = vld [vmem:[%s1866_s7 + $0xc0] sm:$0xff]   ;;  %v1424_v28 = vld [vmem:[%s1866_s7 + $0x8] sm:$0xff]   ;;  %v1428_v32 = vld [vmem:[%s1866_s7 + $0x10] sm:$0xff]  }
  0x17   : > { %v1420_v23 = vld [vmem:[%s1866_s7] sm:$0xff]   ;;  %v1425_v29 = vld [vmem:[%s1866_s7 + $0x88] sm:$0xff]   ;;  %v1429_v33 = vld [vmem:[%s1866_s7 + $0x90] sm:$0xff]   ;;  %v380_v63 = vsub.s32 0, %v379_v55  ;;  %v388_v0 = vsub.s32 2, %v379_v55  ;;  %v384_v3 = vsub.s32 1, %v379_v55  ;;  %s1816_s23 = scalar_lea.hbm %s1868_s9, %s1297_s16 }
  0x18   : > { %s1235_s24 = sshll.u32 %s1646_s29, 3  ;;  %v1421_v24 = vld [vmem:[%s1866_s7 + $0x80] sm:$0xff]   ;;  %v1430_v34 = vld [vmem:[%s1866_s7 + $0x58] sm:$0xff]   ;;  %v1438_v42 = vld [vmem:[%s1866_s7 + $0x68] sm:$0xff]   ;;  %v392_v4 = vsub.s32 3, %v379_v55  ;;  %s1300_s26 = sshll.u32 %s1646_s29, 5 }
  0x19   : > { %s355_s14 = scalar_lea.vmem %s1859_s0, %s1235_s24  ;;  %s364_s18 = scalar_lea.vmem %s1861_s2, %s1235_s24  ;;  %v1431_v35 = vld [vmem:[%s1866_s7 + $0xd8] sm:$0xff]   ;;  %v1434_v38 = vld [vmem:[%s1866_s7 + $0x60] sm:$0xff]   ;;  %v1439_v43 = vld [vmem:[%s1866_s7 + $0xe8] sm:$0xff]  }
  0x1a   : > { %v366_v9 = vld [vmem:[%s355_s14] sm:$0xff]  ;;  %v1432_v36 = vld [vmem:[%s1866_s7 + $0x18] sm:$0xff]   ;;  %v1440_v44 = vld [vmem:[%s1866_s7 + $0x28] sm:$0xff]   ;;  %s360_s28 = scalar_lea.vmem %s1860_s1, %s1300_s26  ;;  %s349_s29 = sand.u32 1, %s1520_s10  }
  0x1b   : > { %v367_v12 = vpack.c.bf16 %v366_v9, %v366_v9  ;;  %v784_v25 = vld [vmem:[%s364_s18] sm:$0xff]  ;;  %v1433_v37 = vld [vmem:[%s1866_s7 + $0x98] sm:$0xff]   ;;  %v1441_v45 = vld [vmem:[%s1866_s7 + $0xa8] sm:$0xff]   ;;  %s1234_s14 = sshll.u32 %s349_s29, 3  ;;  %s1134_s25 = scalar_lea.sflag [#allocation3], %s349_s29 }
  0x1c   : > { %v1435_v39 = vld [vmem:[%s1866_s7 + $0xe0] sm:$0xff]   ;;  %v1442_v46 = vld [vmem:[%s1866_s7 + $0x70] sm:$0xff]   ;;  %v1446_v50 = vld [vmem:[%s1866_s7 + $0x78] sm:$0xff]   ;;  %s351_s17 = scalar_lea.vmem [#allocation2], %s1234_s14  ;;  %s1533_s13 = smov [#allocation2]  }
  0x1d   : > { %1247 = vmatmul.mubr.msk.bf16.vlgmr.msra.gmra.mrb[0].mxu0 %vm438_vm0, %v367_v12  ;;  %1248 = vmatmul.mubr.msk.bf16.vlgmr.msra.gmra.mrb[0].mxu1 %vm438_vm0, %v367_v12  ;;  %v1436_v40 = vld [vmem:[%s1866_s7 + $0x20] sm:$0xff]   ;;  %v1443_v47 = vld [vmem:[%s1866_s7 + $0xf0] sm:$0xff]   ;;  %v1447_v51 = vld [vmem:[%s1866_s7 + $0xf8] sm:$0xff]   ;;  %s1147_s21 = sshll.u32 %s351_s17, 4  ;;  %s1470_s27 = sshll.u32 %s1533_s13, 4  ;;  %s1818_s21 = int_to_ptr.vmem [resolvable:$true] %s1147_s21  ;;  %s1471_s27 = int_to_ptr.vmem [resolvable:$false] %s1470_s27 }
  0x1e   : > { %595 = vmatpush1.bf16.msra.mxu0 %v1406_v10  ;;  %636 = vmatpush1.bf16.msra.mxu1 %v1409_v13  ;;  %v1437_v41 = vld [vmem:[%s1866_s7 + $0xa0] sm:$0xff]   ;;  %v1444_v48 = vld [vmem:[%s1866_s7 + $0x30] sm:$0xff]   ;;  %v1448_v52 = vld [vmem:[%s1866_s7 + $0x38] sm:$0xff]   ;;  %s1466_s26 = scalar_lea.vmem %s1818_s21, 128  ;;  %s1472_s24 = scalar_lea.vmem %s1471_s27, 256 }
  0x1f   : > { %596 = vmatprep.subr.bf16.mxu0 %v1414_v15  ;;  %637 = vmatprep.subr.bf16.mxu1 %v1417_v17  ;;  %v1445_v49 = vld [vmem:[%s1866_s7 + $0xb0] sm:$0xff]   ;;  %v1449_v53 = vld [vmem:[%s1866_s7 + $0xb8] sm:$0xff]   ;;  %v532_v62 = vld [vmem:[%s1865_s6] sm:$0xf]  ;;  %p1467_p11 = scmp.ne.s32.totalorder %s1818_s21, %s1466_s26  ;;  %p1473_p0 = scmp.lt.s32.totalorder %s1818_s21, %s1471_s27 }
  0x20   : > { %626 = vmatprep.mubr.bf16.mxu0 %v1530_v2  ;;  %667 = vmatprep.mubr.bf16.mxu1 %v1530_v2  ;;  %v537_v5 = vrot.slane %v532_v62, %v380_v63  ;;  %v545_v6 = vrot.slane %v532_v62, %v388_v0  ;;  %v541_v7 = vrot.slane %v532_v62, %v384_v3  ;;  %v709_v54 = vld [vmem:[%s360_s28 + $0x8] sm:$0xff]  ;;  %p1474_p1 = scmp.lt.s32.totalorder %s1472_s24, %s1466_s26 }
  0x21   : > { %v549_v8 = vrot.slane %v532_v62, %v392_v4  ;;  %p1468_p12 = pnand %p1467_p11, %p1622_p5 }
  0x22   : > { %597 = vmatpush1.bf16.msra.mxu0 %v1412_v16  ;;  %638 = vmatpush1.bf16.msra.mxu1 %v1415_v18  ;;  %p1475_p2 = por %p1474_p1, %p1473_p0 }
  0x23   : > { %1347 = vmatprep.subr.mxu0 %v1531_v19  ;;  %1303 = vmatprep.subr.bf16.mxu1 %v1418_v21  ;;  %p1469_p13 = pneg %p1468_p12 }
  0x25   : > { %1257 = vmatmul.mubr.msk.bf16.vlgmr.msra.gmra.mrb[4].mxu0 %vm438_vm0, %v367_v12  ;;  %1258 = vmatmul.mubr.msk.bf16.vlgmr.msra.gmra.mrb[4].mxu1 %vm438_vm0, %v367_v12  ;;  %p1476_p3 = pnand %p1475_p2, %p1469_p13 }
  0x26   : > { %1348 = vmatpush3.msra.mxu0 %v785_v20  ;;  %1349 = vmatprep.mubr.msk.f32.mxu0 %vm1532_vm1, %v1531_v19 }
  0x27   : > { %1325 = vmatprep.subr.bf16.mxu0 %v1419_v22  ;;  %1304 = vmatpush3.bf16.msra.mxu1 %v1420_v23 }
  0x28   : > { %1305 = vmatprep.subr.bf16.mxu1 %v1422_v26 }
  0x2b   : > { %1306 = vmatpush3.bf16.msra.mxu1 %v1424_v28 }
  0x2c   : > { %1307 = vmatprep.subr.bf16.mxu1 %v1426_v30 }
  0x2d   : > { %1350 = vmatmul.mubr.msk.f32.vlgmr.msra.gmra.mrb[8].mxu0 %vm786_vm2, %v784_v25 }
  0x2e   : > { %1326 = vmatpush3.bf16.msra.mxu0 %v1421_v24 }
  0x2f   : > { %1327 = vmatprep.subr.bf16.mxu0 %v1423_v27  ;;  %1308 = vmatpush3.bf16.msra.mxu1 %v1428_v32 }
  0x30   : > { %1309 = vmatprep.subr.bf16.mxu1 %v1430_v34 }
  0x32   : > { %1328 = vmatpush3.bf16.msra.mxu0 %v1425_v29 }
  0x33   : > { %1329 = vmatprep.subr.bf16.mxu0 %v1427_v31  ;;  %1310 = vmatpush3.bf16.msra.mxu1 %v1432_v36 }
  0x34   : > { %1311 = vmatprep.subr.bf16.mxu1 %v1434_v38 }
  0x36   : > { %1330 = vmatpush3.bf16.msra.mxu0 %v1429_v33  ;;  %v376_v33 = vld [vmem:[%s1863_s4] sm:$0xf] }
  0x37   : > { %1331 = vmatprep.subr.bf16.mxu0 %v1431_v35  ;;  %1312 = vmatpush3.bf16.msra.mxu1 %v1436_v40  ;;  %v381_v34 = vrot.slane %v376_v33, %v380_v63  ;;  %v389_v35 = vrot.slane %v376_v33, %v388_v0  ;;  %v385_v36 = vrot.slane %v376_v33, %v384_v3 }
  0x38   : > { %1313 = vmatprep.subr.bf16.mxu1 %v1438_v42  ;;  %v393_v38 = vrot.slane %v376_v33, %v392_v4 }
  0x3a   : > { %1332 = vmatpush3.bf16.msra.mxu0 %v1433_v37 }
  0x3b   : > { %1333 = vmatprep.subr.bf16.mxu0 %v1435_v39  ;;  %1314 = vmatpush3.bf16.msra.mxu1 %v1440_v44 }
  0x3c   : > { %1315 = vmatprep.subr.bf16.mxu1 %v1442_v46 }
  0x3e   : > { %1334 = vmatpush3.bf16.msra.mxu0 %v1437_v41 }
  0x3f   : > { %1335 = vmatprep.subr.bf16.mxu0 %v1439_v43  ;;  %1316 = vmatpush3.bf16.msra.mxu1 %v1444_v48  ;;  %v708_v48 = vld [vmem:[%s360_s28] sm:$0xff] }
  0x40   : > { %1317 = vmatprep.subr.bf16.mxu1 %v1446_v50 }
  0x42   : > { %1336 = vmatpush3.bf16.msra.mxu0 %v1441_v45 }
  0x43   : > { %1337 = vmatprep.subr.bf16.mxu0 %v1443_v47  ;;  %1318 = vmatpush3.bf16.msra.mxu1 %v1448_v52  ;;  %v710_v52 = vld [vmem:[%s360_s28 + $0x10] sm:$0xff] }
  0x46   : > { %1338 = vmatpush3.bf16.msra.mxu0 %v1445_v49 }
  0x47   : > { %1339 = vmatprep.subr.bf16.mxu0 %v1447_v51 }
  0x4a   : > { %1340 = vmatpush3.bf16.msra.mxu0 %v1449_v53 }
  0xf0   : > { %v476_v56 = vpop.f32.mrb[0].mxu0  ;;  %v517_v57 = vpop.f32.mrb[0].mxu1 }
  0xf1   : > { %v478_v58 = vpop.f32.mrb[1].mxu0  ;;  %v1798_v59 = vpop.f32.mrb[1].mxu1  ;;  %v477_v40 = vadd.f32 %v476_v56, %v381_v34  ;;  %v518_v43 = vadd.f32 %v517_v57, %v389_v35 }
  0xf2   : > { %v480_v60 = vpop.f32.mrb[2].mxu0  ;;  %v521_v61 = vpop.f32.mrb[2].mxu1  ;;  %v479_v46 = vadd.f32 %v478_v58, %v385_v36  ;;  %v520_v50 = vadd.f32 %v1798_v59, %v393_v38 }
  0xf3   : > { %v481_v1 = vpop.f32.mrb[3].mxu0  ;;  %v522_v2 = vpop.f32.mrb[3].mxu1  ;;  %v711_v60 = vld [vmem:[%s360_s28 + $0x18] sm:$0xff] }
  0xf8   : > { %v628_v9 = vpop.f32.mrb[4].mxu0  ;;  %v669_v10 = vpop.f32.mrb[4].mxu1 }
  0xf9   : > { %v629_v11 = vadd.f32 %v628_v9, %v537_v5  ;;  %v670_v12 = vadd.f32 %v669_v10, %v545_v6  ;;  %v630_v13 = vpop.f32.mrb[5].mxu0  ;;  %v671_v14 = vpop.f32.mrb[5].mxu1 }
  0xfa   : > { %v631_v15 = vadd.f32 %v630_v13, %v541_v7  ;;  %v672_v16 = vadd.f32 %v671_v14, %v549_v8  ;;  %v632_v17 = vpop.f32.mrb[6].mxu0  ;;  %v673_v18 = vpop.f32.mrb[6].mxu1 }
  0xfb   : > { %v1259_v19 = vmul.f32 -1.442695, %v629_v11  ;;  %v1261_v20 = vmul.f32 -1.442695, %v670_v12  ;;  %v633_v21 = vpop.f32.mrb[7].mxu0  ;;  %v674_v22 = vpop.f32.mrb[7].mxu1 }
  0xfc   : > { %v1260_v23 = vmul.f32 -1.442695, %v631_v15  ;;  %v1262_v24 = vmul.f32 -1.442695, %v672_v16 }
  0xfd   : > { %1450 = vpow2.f32 %v1259_v19 }
  0xfe   : > { %1452 = vpow2.f32 %v1261_v20 }
  0xff   : > { %1454 = vpow2.f32 %v1260_v23 }
 0x100   : > { %1456 = vpow2.f32 %v1262_v24  ;;  %v856_v59 = vpop.f32.mrb[8].mxu0 }
 0x101   : > { %v1351_v3 = vpop.f32.mrb[9].mxu0 }
 0x107   : > { %v1451_v25 = vpop.eup %1450 }
 0x108   : > { %v1453_v26 = vpop.eup %1452  ;;  %v688_v27 = vadd.f32 1.0, %v1451_v25 }
 0x109   : > { %v1455_v28 = vpop.eup %1454  ;;  %v690_v29 = vadd.f32 1.0, %v1453_v26 }
 0x10a   : > { %v1457_v30 = vpop.eup %1456  ;;  %1458 = vrcp.f32 %v688_v27  ;;  %v689_v31 = vadd.f32 1.0, %v1455_v28 }
 0x10b   : > { %1460 = vrcp.f32 %v690_v29  ;;  %v691_v32 = vadd.f32 1.0, %v1457_v30 }
 0x10c   : > { %1462 = vrcp.f32 %v689_v31 }
 0x10d   : > { %1464 = vrcp.f32 %v691_v32 }
 0x114   : > { %v1459_v37 = vpop.eup %1458 }
 0x115   : > { %v1461_v39 = vpop.eup %1460  ;;  %v700_v41 = vmul.f32 %v1459_v37, %v629_v11 }
 0x116   : > { %v1463_v42 = vpop.eup %1462  ;;  %v702_v44 = vmul.f32 %v1461_v39, %v670_v12 }
 0x117   : > { %v1465_v45 = vpop.eup %1464  ;;  %v704_v47 = vmul.f32 %v700_v41, %v477_v40  ;;  %v701_v49 = vmul.f32 %v1463_v42, %v631_v15 }
 0x118   : > { %v706_v51 = vmul.f32 %v702_v44, %v518_v43  ;;  %v703_v53 = vmul.f32 %v1465_v45, %v672_v16 }
 0x119   : > { %v705_v55 = vmul.f32 %v701_v49, %v479_v46  ;;  %v712_v61 = vmul.f32 %v708_v48, %v704_v47 }
 0x11a   : > { %v707_v56 = vmul.f32 %v703_v53, %v520_v50  ;;  %v714_v62 = vmul.f32 %v710_v52, %v706_v51 }
 0x11b   : > { %v713_v63 = vmul.f32 %v709_v54, %v705_v55  ;;  %v716_v1 = vpack.c.bf16 %v712_v61, %v712_v61 }
 0x11c   : > { %v715_v57 = vmul.f32 %v711_v60, %v707_v56  ;;  %v718_v2 = vpack.c.bf16 %v714_v62, %v714_v62 }
 0x11d   : > { %v717_v0 = vpack.c.bf16 %v713_v63, %v713_v63 }
 0x11e   : > { %v719_v58 = vpack.c.bf16 %v715_v57, %v715_v57 }
 0x11f   : > { %1084 = vmatprep.mubr.bf16.mxu1 %v717_v0 }
 0x120   : > { %1124 = vmatprep.mubr.bf16.mxu0 %v719_v58  ;;  %1085 = vmatmul.mubr.bf16.vlgmr.msra.gmra.mrb[8].mxu1 %v716_v1 }
 0x121   : > { %1125 = vmatmul.mubr.bf16.vlgmr.msra.gmra.mrb[12].mxu0 %v718_v2 }
 0x1f3   : > { %v1319_v4 = vpop.f32.mrb[8].mxu1 }
 0x1f4   : > { %v1341_v5 = vpop.f32.mrb[12].mxu0  ;;  %v1320_v6 = vpop.f32.mrb[9].mxu1 }
 0x1f5   : > { %v1321_v7 = vadd.f32 %v1320_v6, %v1319_v4  ;;  %v1342_v8 = vpop.f32.mrb[13].mxu0  ;;  %v1322_v9 = vpop.f32.mrb[10].mxu1 }
 0x1f6   : > { %v1343_v10 = vadd.f32 %v1342_v8, %v1341_v5  ;;  %v1344_v11 = vpop.f32.mrb[14].mxu0  ;;  %v1323_v12 = vpop.f32.mrb[11].mxu1 }
 0x1f7   : > { %v1087_v13 = vadd.f32 %v1321_v7, %v856_v59  ;;  %v1345_v14 = vpop.f32.mrb[15].mxu0 }
 0x1f9   : > { %v1127_v15 = vadd.f32 %v1343_v10, %v1087_v13 }
 0x1fb   : > { %1132 = vst.msk [vmem:[%s351_s17] sm:$0xff] %vm438_vm0, %v1127_v15 }
 0x1fc   : > { %1479 = shalt.err (!%p1476_p3)
}
 0x1fd   : > { %s1480_s28 = scalar_lea.hbm %s1816_s23, 128  ;;  %s1484_s16 = scalar_lea.hbm %s1868_s9, 256 }
 0x1fe   : > { %p1481_p4 = scmp.ne.s32.totalorder %s1816_s23, %s1480_s28  ;;  %p1485_p9 = scmp.lt.u32.totalorder %s1816_s23, %s1868_s9 }
 0x1ff   : > { %p1486_p10 = scmp.lt.u32.totalorder %s1484_s16, %s1480_s28  ;;  %p1488_p12 = scmp.lt.u32.totalorder %s1480_s28, %s1816_s23 }
 0x200   : > { %p1482_p7 = pnand %p1481_p4, %p1622_p5 }
 0x201   : > { %p1487_p11 = por %p1486_p10, %p1485_p9 }
 0x202   : > { %p1483_p8 = pneg %p1482_p7 }
 0x203   : > { %p1489_p13 = por %p1488_p12, %p1487_p11 }
 0x205   : > { %p1490_p0 = pnand %p1489_p13, %p1483_p8 }
 0x207   : > { %1493 = shalt.err (!%p1490_p0)
}
 0x208   : > { %1352 = dma.vmem_to_hbm [thread:$0]  (%p1622_p5), %s1818_s21, 128, %s1816_s23, %s1134_s25  }
 0x209 PF: > { %p1358_p1 = scmp.ge.s32.totalorder %s1528_s12, 2  ;;  %s1159_s22 = sand.u32 1, %s1516_s30  }
 0x20a   : > { %s1160_s26 = scalar_lea.sflag [#allocation3], %s1159_s22 }
 0x20b   : > { %p1355_p2 = pnand %p1358_p1, %p1626_p6 }
 0x20d   : > { %1511 = dma.done.wait (!%p1355_p2), %s1160_s26, 128  }
 0x20e   : > { %1513 = vsyncadd (!%p1355_p2), %s1160_s26, 4294967168  ;;  %s1872_s13 = sld [smem:[#allocation5_spill]]  ;;  %p19_p3 = scmp.ge.s32.totalorder %s1609_s15, 4  }
 0x20f   : > { %s1873_s30 = smov %s1520_s10  ;;  %s1874_s10 = smov %s1524_s11 }
 0x210   : > { %s1876_s12 = smov %s1609_s15  ;;  %21 = sbr.rel (!%p19_p3) target bundleno = 3 (0x3), region = 97 }
 0x214   : > { %s1875_s11 = smov %s1872_s13 }
 0x217   :  { %1165 = vsyncpa [#allocation3], 1 }
 0x218   :  { %1167 = vsyncpa [#allocation3 + $0x1], 1 }

</bundles_post_ra>
